<compile_context>
chip_gen: v6e
topology: v6e:2x2x1
jax: 0.10.0
libtpu: 0.0.40
codegen_flags: <defaults>
</compile_context>

<pallas_src>
import jax
import jax.numpy as jnp
from jax.experimental import pallas as pl
from jax.experimental.pallas import tpu as pltpu


def _round_up(x, m):
    return (x + m - 1) // m * m


def edge_mlp_kernel(comb_ref, w1_ref, b1_ref, w2_ref, b2_ref, out_ref):
    # Layer 1: single lane-dense (K = F_total) MXU matmul, f32 accumulation.
    h = jnp.dot(comb_ref[...], w1_ref[...], preferred_element_type=jnp.float32)
    h = jnp.maximum(h + b1_ref[...], 0.0)
    # Layer 2 (+ ReLU); cast activations back to the weight dtype for the MXU.
    o = jnp.dot(h.astype(w2_ref.dtype), w2_ref[...],
                preferred_element_type=jnp.float32)
    o = jnp.maximum(o + b2_ref[...], 0.0)
    # TODO(synk): output lane-width == hidden (32) -> masked stores; removing
    # them requires fusing the downstream MEGNet stage (or a lane-dense output
    # reshape), which is out of scope for this standalone module.
    out_ref[...] = o.astype(out_ref.dtype)


def megnet_edge_model(src, dest, edge_attr, u, batch, params, *,
                      tm=1024, compute_dtype=jnp.bfloat16):
    """Pallas implementation of Megnet_EdgeModel.forward."""
    E = src.shape[0]
    out_dtype = src.dtype
    hidden = params["b2"].shape[-1]

    # ---- wrapper glue: gather + concat (fused by XLA), pre-concat W1 --------
    comb = jnp.concatenate([src, dest, edge_attr, u[batch]], axis=1)
    f_total = comb.shape[1]
    w1 = jnp.concatenate(
        [params["w1s"], params["w1d"], params["w1e"], params["w1u"]], axis=0)
    w2 = params["w2"]
    b1 = params["b1"].reshape(1, hidden).astype(jnp.float32)
    b2 = params["b2"].reshape(1, hidden).astype(jnp.float32)

    # bf16 MXU inputs; accumulation stays f32 inside the kernel.
    comb = comb.astype(compute_dtype)
    w1 = w1.astype(compute_dtype)
    w2 = w2.astype(compute_dtype)

    # ---- tiling: biggest row tile that makes sense, pad ragged E ------------
    tm_eff = max(8, _round_up(min(tm, _round_up(E, 8)), 8))
    e_pad = _round_up(E, tm_eff)
    if e_pad != E:
        comb = jnp.pad(comb, ((0, e_pad - E), (0, 0)))
    grid = (e_pad // tm_eff,)

    row_in_spec = pl.BlockSpec((tm_eff, f_total), lambda i: (i, 0))
    row_out_spec = pl.BlockSpec((tm_eff, hidden), lambda i: (i, 0))

    def const_spec(shape):
        # Grid-invariant block: constant index_map -> stays resident in VMEM.
        return pl.BlockSpec(shape, lambda i: (0, 0))

    out = pl.pallas_call(
        edge_mlp_kernel,
        out_shape=jax.ShapeDtypeStruct((e_pad, hidden), out_dtype),
        grid_spec=pltpu.PrefetchScalarGridSpec(
            num_scalar_prefetch=0,
            grid=grid,
            in_specs=[
                row_in_spec,
                const_spec(w1.shape),
                const_spec(b1.shape),
                const_spec(w2.shape),
                const_spec(b2.shape),
            ],
            out_specs=row_out_spec,
        ),
        compiler_params=pltpu.CompilerParams(
            dimension_semantics=("parallel",)),
    )(comb, w1, b1, w2, b2)

    return out[:E]


def reference_f32(src, dest, edge_attr, u, batch, params):
    """Full-precision reference (matches the PyTorch module semantics)."""
    comb = jnp.concatenate([src, dest, edge_attr, u[batch]], axis=1)
    w1 = jnp.concatenate(
        [params["w1s"], params["w1d"], params["w1e"], params["w1u"]], axis=0)
    h = jnp.maximum(comb @ w1 + params["b1"], 0.0)
    return jnp.maximum(h @ params["w2"] + params["b2"], 0.0)


def reference_matched(src, dest, edge_attr, u, batch, params,
                      compute_dtype=jnp.bfloat16):
    """Reference using the same bf16-matmul / f32-accumulate recipe."""
    comb = jnp.concatenate([src, dest, edge_attr, u[batch]],
                           axis=1).astype(compute_dtype)
    w1 = jnp.concatenate(
        [params["w1s"], params["w1d"], params["w1e"], params["w1u"]],
        axis=0).astype(compute_dtype)
    w2 = params["w2"].astype(compute_dtype)
    h = jnp.dot(comb, w1, preferred_element_type=jnp.float32) + params["b1"]
    h = jnp.maximum(h, 0.0)
    o = jnp.dot(h.astype(compute_dtype), w2,
                preferred_element_type=jnp.float32) + params["b2"]
    return jnp.maximum(o, 0.0)


if __name__ == "__main__":
    key = jax.random.PRNGKey(0)

    # Small MEGNet-style shapes.
    E = 64          # number of edges
    B = 2           # number of graphs
    F_node = 32     # node feature dim (src / dest)
    F_edge = 32     # edge feature dim
    F_u = 32        # global state dim
    hidden = 32     # FCNN hidden / output dim

    ks = jax.random.split(key, 12)
    src = jax.random.normal(ks[0], (E, F_node), dtype=jnp.float32)
    dest = jax.random.normal(ks[1], (E, F_node), dtype=jnp.float32)
    edge_attr = jax.random.normal(ks[2], (E, F_edge), dtype=jnp.float32)
    u = jax.random.normal(ks[3], (B, F_u), dtype=jnp.float32)
    batch = jax.random.randint(ks[4], (E,), 0, B, dtype=jnp.int32)

    # Deterministic parameter init (synthetic weights, no checkpoint load).
    def winit(k, shape):
        fan_in = shape[0]
        return jax.random.normal(k, shape, dtype=jnp.float32) / jnp.sqrt(fan_in)

    params = {
        "w1s": winit(ks[5], (F_node, hidden)),
        "w1d": winit(ks[6], (F_node, hidden)),
        "w1e": winit(ks[7], (F_edge, hidden)),
        "w1u": winit(ks[8], (F_u, hidden)),
        "b1": jax.random.normal(ks[9], (1, hidden), dtype=jnp.float32) * 0.01,
        "w2": winit(ks[10], (hidden, hidden)),
        "b2": jax.random.normal(ks[11], (1, hidden), dtype=jnp.float32) * 0.01,
    }

    out = megnet_edge_model(src, dest, edge_attr, u, batch, params)
    out = jax.block_until_ready(out)
    assert out.shape == (E, hidden)

    # Tight check against a reference computed with the same bf16/f32 recipe.
    ref_m = reference_matched(src, dest, edge_attr, u, batch, params)
    assert jnp.allclose(out, ref_m, atol=1e-2, rtol=1e-2), \
        "mismatch vs matched-precision reference"

    # Loose sanity check against the full-f32 reference (bf16 matmul error).
    ref_f = reference_f32(src, dest, edge_attr, u, batch, params)
    assert jnp.allclose(out, ref_f, atol=1e-1, rtol=1e-1), \
        "mismatch vs f32 reference"

    print("KERNEL_OK")
</pallas_src>

<mosaic_0001>
module attributes {stable_mosaic.version = 11 : i64} {
  func.func @edge_mlp_kernel(%arg0: i32, %arg1: memref<64x128xbf16, #tpu.memory_space<vmem>>, %arg2: memref<128x32xbf16, #tpu.memory_space<vmem>>, %arg3: memref<1x32xf32, #tpu.memory_space<vmem>>, %arg4: memref<32x32xbf16, #tpu.memory_space<vmem>>, %arg5: memref<1x32xf32, #tpu.memory_space<vmem>>, %arg6: memref<64x32xf32, #tpu.memory_space<vmem>>) attributes {dimension_semantics = [#tpu.dimension_semantics<parallel>], iteration_bounds = array<i64: 1>, scalar_prefetch = 0 : i64, scratch_operands = 0 : i64, tpu.core_type = #tpu.core_type<tc>, window_params = [{transform_indices = @transform_0, window_bounds = array<i64: 64, 128>}, {pipeline_mode = #tpu.pipeline_mode<synchronous>, transform_indices = @transform_1, window_bounds = array<i64: 128, 32>}, {pipeline_mode = #tpu.pipeline_mode<synchronous>, transform_indices = @transform_2, window_bounds = array<i64: 1, 32>}, {pipeline_mode = #tpu.pipeline_mode<synchronous>, transform_indices = @transform_3, window_bounds = array<i64: 32, 32>}, {pipeline_mode = #tpu.pipeline_mode<synchronous>, transform_indices = @transform_4, window_bounds = array<i64: 1, 32>}, {transform_indices = @transform_5, window_bounds = array<i64: 64, 32>}]} {
    %c0 = arith.constant 0 : index
    %c0_0 = arith.constant 0 : index
    %0 = vector.load %arg1[%c0, %c0_0] : memref<64x128xbf16, #tpu.memory_space<vmem>>, vector<64x128xbf16>
    %c0_1 = arith.constant 0 : index
    %c0_2 = arith.constant 0 : index
    %1 = vector.load %arg2[%c0_1, %c0_2] : memref<128x32xbf16, #tpu.memory_space<vmem>>, vector<128x32xbf16>
    %cst = arith.constant dense<0.000000e+00> : vector<64x32xf32>
    %2 = tpu.matmul %0, %1, %cst {dimension_numbers = #tpu.dot_dimension_numbers<[1], [0], [0], [1], [0, 0, 1, 1], [], []>} : vector<64x128xbf16>, vector<128x32xbf16>, vector<64x32xf32> -> vector<64x32xf32>
    %c0_3 = arith.constant 0 : index
    %c0_4 = arith.constant 0 : index
    %3 = vector.load %arg3[%c0_3, %c0_4] : memref<1x32xf32, #tpu.memory_space<vmem>>, vector<1x32xf32>
    %4 = vector.broadcast %3 : vector<1x32xf32> to vector<64x32xf32>
    %5 = arith.addf %2, %4 : vector<64x32xf32>
    %cst_5 = arith.constant 0.000000e+00 : f32
    %6 = vector.broadcast %cst_5 : f32 to vector<64x32xf32>
    %7 = arith.maximumf %5, %6 : vector<64x32xf32>
    %8 = arith.truncf %7 : vector<64x32xf32> to vector<64x32xbf16>
    %c0_6 = arith.constant 0 : index
    %c0_7 = arith.constant 0 : index
    %9 = vector.load %arg4[%c0_6, %c0_7] : memref<32x32xbf16, #tpu.memory_space<vmem>>, vector<32x32xbf16>
    %cst_8 = arith.constant dense<0.000000e+00> : vector<64x32xf32>
    %10 = tpu.matmul %8, %9, %cst_8 {dimension_numbers = #tpu.dot_dimension_numbers<[1], [0], [0], [1], [0, 0, 1, 1], [], []>} : vector<64x32xbf16>, vector<32x32xbf16>, vector<64x32xf32> -> vector<64x32xf32>
    %c0_9 = arith.constant 0 : index
    %c0_10 = arith.constant 0 : index
    %11 = vector.load %arg5[%c0_9, %c0_10] : memref<1x32xf32, #tpu.memory_space<vmem>>, vector<1x32xf32>
    %12 = vector.broadcast %11 : vector<1x32xf32> to vector<64x32xf32>
    %13 = arith.addf %10, %12 : vector<64x32xf32>
    %cst_11 = arith.constant 0.000000e+00 : f32
    %14 = vector.broadcast %cst_11 : f32 to vector<64x32xf32>
    %15 = arith.maximumf %13, %14 : vector<64x32xf32>
    %c0_12 = arith.constant 0 : index
    %c0_13 = arith.constant 0 : index
    %16 = vector.load %arg6[%c0_12, %c0_13] : memref<64x32xf32, #tpu.memory_space<vmem>>, vector<64x32xf32>
    tpu.vector_store %arg6[%c0_12, %c0_13], %15 {strides = array<i32>} : memref<64x32xf32, #tpu.memory_space<vmem>>, vector<64x32xf32>,
    return
  }
  func.func @transform_0(%arg0: i32) -> (i32, i32) {
    %c0_i32 = arith.constant 0 : i32
    %c0_i32_0 = arith.constant 0 : i32
    return %arg0, %c0_i32 : i32, i32
  }
  func.func @transform_1(%arg0: i32) -> (i32, i32) {
    %c0_i32 = arith.constant 0 : i32
    %c0_i32_0 = arith.constant 0 : i32
    %c0_i32_1 = arith.constant 0 : i32
    return %c0_i32, %c0_i32_0 : i32, i32
  }
  func.func @transform_2(%arg0: i32) -> (i32, i32) {
    %c0_i32 = arith.constant 0 : i32
    %c0_i32_0 = arith.constant 0 : i32
    %c0_i32_1 = arith.constant 0 : i32
    return %c0_i32, %c0_i32_0 : i32, i32
  }
  func.func @transform_3(%arg0: i32) -> (i32, i32) {
    %c0_i32 = arith.constant 0 : i32
    %c0_i32_0 = arith.constant 0 : i32
    %c0_i32_1 = arith.constant 0 : i32
    return %c0_i32, %c0_i32_0 : i32, i32
  }
  func.func @transform_4(%arg0: i32) -> (i32, i32) {
    %c0_i32 = arith.constant 0 : i32
    %c0_i32_0 = arith.constant 0 : i32
    %c0_i32_1 = arith.constant 0 : i32
    return %c0_i32, %c0_i32_0 : i32, i32
  }
  func.func @transform_5(%arg0: i32) -> (i32, i32) {
    %c0_i32 = arith.constant 0 : i32
    %c0_i32_0 = arith.constant 0 : i32
    return %arg0, %c0_i32 : i32, i32
  }
}

</mosaic_0001>

<bundles_post_ra>
// kernel: tpu_custom_call.1
= control target key start
LH: loop header
LB: loop body
LE: loop exit
PB: predicated region body
PF: predicated region fallthrough
CT: control target
= control target key end

     0   :  { %vm224_vm0 = vcmask 261120   ;;  %s524_s1 = inlined_call_operand.vmem [shape: bf16[128,32], index: 1, kind: input, shape index: {}]   ;;  %s525_s0 = inlined_call_operand.vmem [shape: bf16[64,128], index: 0, kind: input, shape index: {}]   ;;  %s526_s3 = inlined_call_operand.vmem [shape: bf16[32,32], index: 3, kind: input, shape index: {}]   ;;  %s527_s2 = inlined_call_operand.vmem [shape: f32[1,32], index: 2, kind: input, shape index: {}]   ;;  %s528_s4 = inlined_call_operand.vmem [shape: f32[1,32], index: 4, kind: input, shape index: {}]   ;;  %s529_s5 = inlined_call_operand.vmem [shape: f32[64,32], index: 5, kind: output, shape index: {}]  }
   0x1   :  { %v396_v0 = vld [vmem:[%s524_s1 + $0x38] sm:$0xff]   ;;  %v397_v1 = vld [vmem:[%s524_s1 + $0x30] sm:$0xff]   ;;  %v398_v2 = vld [vmem:[%s524_s1 + $0x28] sm:$0xff]  }
   0x2   :  { %360 = vmatprep.subr.bf16.mxu0 %v396_v0  ;;  %v399_v3 = vld [vmem:[%s524_s1 + $0x20] sm:$0xff]   ;;  %v400_v5 = vld [vmem:[%s524_s1 + $0x18] sm:$0xff]   ;;  %v401_v6 = vld [vmem:[%s524_s1 + $0x10] sm:$0xff]  }
   0x3   :  { %361 = vmatpush3.bf16.msra.mxu0 %v396_v0  ;;  %v404_v4 = vld [vmem:[%s525_s0] sm:$0xff]   ;;  %v402_v7 = vld [vmem:[%s524_s1 + $0x8] sm:$0xff]   ;;  %v406_v10 = vld [vmem:[%s525_s0 + $0x10] sm:$0xff]  }
   0x4   :  { %362 = vmatprep.subr.bf16.mxu0 %v397_v1  ;;  %376 = vmatprep.mubr.bf16.mxu0 %v404_v4  ;;  %v403_v8 = vld [vmem:[%s524_s1] sm:$0xff]   ;;  %v405_v9 = vld [vmem:[%s525_s0 + $0x8] sm:$0xff]   ;;  %v407_v11 = vld [vmem:[%s525_s0 + $0x18] sm:$0xff]  }
   0x5   :  { %v408_v12 = vld [vmem:[%s526_s3 + $0x8] sm:$0xff]   ;;  %v409_v13 = vld [vmem:[%s526_s3] sm:$0xff]  }
   0x6   :  { %384 = vmatprep.subr.bf16.mxu1 %v408_v12  ;;  %v322_v16 = vld [vmem:[%s527_s2] ss:$0 sm:$0xff] }
   0x7   :  { %363 = vmatpush3.bf16.msra.mxu0 %v397_v1  ;;  %385 = vmatpush3.bf16.msra.mxu1 %v408_v12  ;;  %v335_v43 = vld [vmem:[%s528_s4] ss:$0 sm:$0xff] }
   0x8   :  { %364 = vmatprep.subr.bf16.mxu0 %v398_v2  ;;  %386 = vmatprep.subr.bf16.mxu1 %v409_v13 }
   0xb   :  { %365 = vmatpush3.bf16.msra.mxu0 %v398_v2  ;;  %387 = vmatpush3.bf16.msra.mxu1 %v409_v13 }
   0xc   :  { %366 = vmatprep.subr.bf16.mxu0 %v399_v3 }
   0xf   :  { %367 = vmatpush3.bf16.msra.mxu0 %v399_v3 }
  0x10   :  { %368 = vmatprep.subr.bf16.mxu0 %v400_v5 }
  0x13   :  { %369 = vmatpush3.bf16.msra.mxu0 %v400_v5 }
  0x14   :  { %370 = vmatprep.subr.bf16.mxu0 %v401_v6 }
  0x17   :  { %371 = vmatpush3.bf16.msra.mxu0 %v401_v6 }
  0x18   :  { %372 = vmatprep.subr.bf16.mxu0 %v402_v7 }
  0x1b   :  { %373 = vmatpush3.bf16.msra.mxu0 %v402_v7 }
  0x1c   :  { %374 = vmatprep.subr.bf16.mxu0 %v403_v8 }
  0x1f   :  { %375 = vmatpush3.bf16.msra.mxu0 %v403_v8 }
  0x22   :  { %377 = vmatmul.mubr.bf16.vlgmr.msra.gmra.mxu0 %v405_v9 }
  0x23   :  { %380 = vmatprep.mubr.bf16.mxu0 %v406_v10 }
  0x2a   :  { %381 = vmatmul.mubr.bf16.gmra.mxu0 %v407_v11 }
  0xe2   :  { %v378_v14 = vpop.f32.mrf.mxu0 }
  0xe3   :  { %v167_v20 = vadd.f32 %v378_v14, %v322_v16 }
  0xe4   :  { %v158_v15 = vpop.f32.mrf.mxu0 }
  0xe5   :  { %v159_v18 = vadd.f32 %v322_v16, %v158_v15  ;;  %v191_v27 = vmax.f32 %v167_v20, 0.0 }
  0xe6   :  { %v379_v17 = vpop.f32.mrf.mxu0 }
  0xe7   :  { %v170_v19 = vadd.f32 %v379_v17, %v322_v16  ;;  %v189_v25 = vmax.f32 %v159_v18, 0.0 }
  0xe8   :  { %v161_v21 = vpop.f32.mrf.mxu0 }
  0xe9   :  { %v162_v22 = vadd.f32 %v322_v16, %v161_v21  ;;  %v192_v23 = vmax.f32 %v170_v19, 0.0 }
  0xea   :  { %v382_v24 = vpop.f32.mrf.mxu0 }
  0xeb   :  { %v190_v26 = vmax.f32 %v162_v22, 0.0  ;;  %v198_v30 = vpack.c.bf16 %v192_v23, %v191_v27  ;;  %v183_v34 = vadd.f32 %v382_v24, %v322_v16 }
  0xec   :  { %v174_v28 = vpop.f32.mrf.mxu0 }
  0xed   :  { %v197_v29 = vpack.c.bf16 %v190_v26, %v189_v25  ;;  %v175_v32 = vadd.f32 %v322_v16, %v174_v28  ;;  %v195_v40 = vmax.f32 %v183_v34, 0.0 }
  0xee   :  { %v383_v31 = vpop.f32.mrf.mxu0 }
  0xef   :  { %v186_v33 = vadd.f32 %v383_v31, %v322_v16  ;;  %388 = vmatprep.mubr.msk.bf16.mxu1 %vm224_vm0, %v197_v29  ;;  %v193_v38 = vmax.f32 %v175_v32, 0.0 }
  0xf0   :  { %v177_v35 = vpop.f32.mrf.mxu0  ;;  %389 = vmatmul.mubr.msk.bf16.vlgmr.msra.gmra.mxu1 %vm224_vm0, %v198_v30 }
  0xf1   :  { %v178_v36 = vadd.f32 %v322_v16, %v177_v35  ;;  %v196_v37 = vmax.f32 %v186_v33, 0.0 }
  0xf3   :  { %v194_v39 = vmax.f32 %v178_v36, 0.0  ;;  %v200_v42 = vpack.c.bf16 %v196_v37, %v195_v40 }
  0xf5   :  { %v199_v41 = vpack.c.bf16 %v194_v39, %v193_v38 }
  0xf7   :  { %392 = vmatprep.mubr.msk.bf16.mxu1 %vm224_vm0, %v199_v41 }
  0xf8   :  { %393 = vmatmul.mubr.msk.bf16.gmra.mxu1 %vm224_vm0, %v200_v42 }
 0x1b0   :  { %v390_v44 = vpop.f32.mrf.mxu1 }
 0x1b1   :  { %v280_v45 = vadd.f32 %v390_v44, %v335_v43 }
 0x1b2   :  { %v271_v46 = vpop.f32.mrf.mxu1 }
 0x1b3   :  { %v304_v47 = vmax.f32 %v280_v45, 0.0  ;;  %v272_v48 = vadd.f32 %v335_v43, %v271_v46 }
 0x1b4   :  { %v391_v49 = vpop.f32.mrf.mxu1 }
 0x1b5   :  { %312 = vst.msk [vmem:[%s529_s5 + $0x10] sm:$0xff] %vm224_vm0, %v304_v47  ;;  %v302_v50 = vmax.f32 %v272_v48, 0.0  ;;  %v283_v51 = vadd.f32 %v391_v49, %v335_v43 }
 0x1b6   :  { %v274_v52 = vpop.f32.mrf.mxu1 }
 0x1b7   :  { %310 = vst.msk [vmem:[%s529_s5] sm:$0xff] %vm224_vm0, %v302_v50  ;;  %v305_v53 = vmax.f32 %v283_v51, 0.0  ;;  %v275_v54 = vadd.f32 %v335_v43, %v274_v52 }
 0x1b8   :  { %v394_v55 = vpop.f32.mrf.mxu1 }
 0x1b9   :  { %313 = vst.msk [vmem:[%s529_s5 + $0x18] sm:$0xff] %vm224_vm0, %v305_v53  ;;  %v303_v56 = vmax.f32 %v275_v54, 0.0  ;;  %v296_v57 = vadd.f32 %v394_v55, %v335_v43 }
 0x1ba   :  { %v287_v58 = vpop.f32.mrf.mxu1 }
 0x1bb   :  { %311 = vst.msk [vmem:[%s529_s5 + $0x8] sm:$0xff] %vm224_vm0, %v303_v56  ;;  %v308_v59 = vmax.f32 %v296_v57, 0.0  ;;  %v288_v60 = vadd.f32 %v335_v43, %v287_v58 }
 0x1bc   :  { %v395_v61 = vpop.f32.mrf.mxu1 }
 0x1bd   :  { %316 = vst.msk [vmem:[%s529_s5 + $0x30] sm:$0xff] %vm224_vm0, %v308_v59  ;;  %v306_v62 = vmax.f32 %v288_v60, 0.0  ;;  %v299_v63 = vadd.f32 %v395_v61, %v335_v43 }
 0x1be   :  { %v290_v0 = vpop.f32.mrf.mxu1 }
 0x1bf   :  { %314 = vst.msk [vmem:[%s529_s5 + $0x20] sm:$0xff] %vm224_vm0, %v306_v62  ;;  %v309_v1 = vmax.f32 %v299_v63, 0.0  ;;  %v291_v2 = vadd.f32 %v335_v43, %v290_v0 }
 0x1c1   :  { %317 = vst.msk [vmem:[%s529_s5 + $0x38] sm:$0xff] %vm224_vm0, %v309_v1  ;;  %v307_v3 = vmax.f32 %v291_v2, 0.0 }
 0x1c3   :  { %315 = vst.msk [vmem:[%s529_s5 + $0x28] sm:$0xff] %vm224_vm0, %v307_v3 }

</bundles_post_ra>
